<compile_context>
chip_gen: v7x
topology: tpu7x:2x2x1
jax: 0.10.0
libtpu: 0.0.40
codegen_flags: <defaults>
</compile_context>

<pallas_src>
import functools

import jax
import jax.numpy as jnp
import numpy as np
from jax.experimental import pallas as pl
from jax.experimental.pallas import tpu as pltpu


def flow_prediction_kernel(x_ref, w_ref, gb_ref, o_ref, *, width, eps):
    # x_ref  : (N, Cin, H*W)   VMEM — NCHW input with H,W merged (lanes = H*W)
    # w_ref  : (9, Cout, Cin)  VMEM — conv taps ordered k = kh*3 + kw
    # gb_ref : (2*Cout,)       SMEM — [gamma_0..gamma_{C-1}, beta_0..beta_{C-1}]
    # o_ref  : (N, Cout, H*W)  VMEM — output (lanes = H*W -> unmasked stores)
    xf = x_ref[...]
    N, Cin, HW = xf.shape
    _, Cout, _ = w_ref.shape
    W = width

    # ---- boundary masks: built once, reused (no per-tap re-broadcast) ------
    pos = jax.lax.broadcasted_iota(jnp.int32, (1, 1, HW), 2)
    col = pos % W
    # Horizontal (kw) padding: pre-mask the roll *sources* (one where each).
    #   kw=0 taps read x[p-1] -> contributions from the last column are pad.
    #   kw=2 taps read x[p+1] -> contributions from the first column are pad.
    x_src = (
        jnp.where(col != (W - 1), xf, 0.0),   # source for kw = 0
        xf,                                   # source for kw = 1
        jnp.where(col != 0, xf, 0.0),         # source for kw = 2
    )
    # Vertical (kh) padding: mask rolled taps on the first / last output row.
    not_row0 = jnp.broadcast_to(pos >= W, (N, Cin, HW))        # for kh = 0
    not_rowL = jnp.broadcast_to(pos < (HW - W), (N, Cin, HW))  # for kh = 2

    # ---- 3x3 conv: 9 accumulated (Cout,Cin) x (Cin,HW) MXU dots ------------
    acc = [jnp.zeros((Cout, HW), jnp.float32) for _ in range(N)]
    for kh in range(3):
        for kw in range(3):
            off = (kh - 1) * W + (kw - 1)          # flat source offset
            src = x_src[kw]
            if off == 0:
                tap = src                          # center tap: no roll
            else:
                # tap[p] = src[p + off] (wrap artifacts handled by the masks)
                tap = pltpu.roll(src, shift=(-off) % HW, axis=2)
            if kh == 0:
                tap = jnp.where(not_row0, tap, 0.0)
            elif kh == 2:
                tap = jnp.where(not_rowL, tap, 0.0)
            wk = w_ref[kh * 3 + kw]                # (Cout, Cin)
            for n in range(N):                     # N = 2: unrolled 2-D dots
                acc[n] = acc[n] + jnp.dot(wk, tap[n],
                                          preferred_element_type=jnp.float32)

    # ---- training-mode BatchNorm (fused one-pass stats) + ReLU -------------
    # Conv bias omitted: it is cancelled exactly by the batch-mean subtraction.
    s1 = acc[0].sum(axis=1, keepdims=True)                  # (Cout, 1)
    s2 = (acc[0] * acc[0]).sum(axis=1, keepdims=True)
    for n in range(1, N):
        s1 = s1 + acc[n].sum(axis=1, keepdims=True)
        s2 = s2 + (acc[n] * acc[n]).sum(axis=1, keepdims=True)
    inv_count = 1.0 / float(N * HW)
    mean = s1 * inv_count                                   # (Cout, 1)
    var = s2 * inv_count - mean * mean                      # biased batch var
    gamma = jnp.concatenate(
        [jnp.full((1, 1), gb_ref[c], jnp.float32) for c in range(Cout)],
        axis=0)                                             # (Cout, 1)
    beta = jnp.concatenate(
        [jnp.full((1, 1), gb_ref[Cout + c], jnp.float32) for c in range(Cout)],
        axis=0)                                             # (Cout, 1)
    scale = gamma * jax.lax.rsqrt(var + eps)                # (Cout, 1)
    shift = beta - mean * scale                             # (Cout, 1)
    for n in range(N):
        o_ref[n] = jnp.maximum(acc[n] * scale + shift, 0.0)


def flow_prediction(x_nchw, weight_oihw, bias, gamma, beta, *, eps=0.1):
    """Conv2d(3x3, pad=1, bias) -> BatchNorm2d(batch stats, eps) -> ReLU.

    x_nchw      : (N, Cin, H, W) float32
    weight_oihw : (Cout, Cin, 3, 3) float32 (PyTorch OIHW layout)
    bias        : (Cout,) — accepted for interface fidelity; it is cancelled
                  exactly by the training-mode batch-mean subtraction.
    Returns (N, Cout, H, W) float32.
    """
    del bias  # exactly cancelled by BN's batch-mean subtraction
    N, Cin, H, W = x_nchw.shape
    Cout = weight_oihw.shape[0]
    HW = H * W

    # Free minor-dim merge of contiguous dims — no transpose, no HBM shuffle.
    xf = x_nchw.reshape(N, Cin, HW).astype(jnp.float32)
    # (Cout, Cin, 3, 3) -> (kh, kw, Cout, Cin) -> (9, Cout, Cin): ~1 KB.
    w9 = jnp.transpose(weight_oihw, (2, 3, 0, 1)).reshape(9, Cout, Cin)
    w9 = w9.astype(jnp.float32)
    gb = jnp.concatenate([gamma, beta]).astype(jnp.float32)   # (2*Cout,)

    kernel = functools.partial(flow_prediction_kernel, width=W, eps=float(eps))

    out = pl.pallas_call(
        kernel,
        out_shape=jax.ShapeDtypeStruct((N, Cout, HW), jnp.float32),
        grid=(1,),
        in_specs=[
            pl.BlockSpec((N, Cin, HW), lambda i: (0, 0, 0)),
            pl.BlockSpec((9, Cout, Cin), lambda i: (0, 0, 0)),
            pl.BlockSpec(memory_space=pltpu.MemorySpace.SMEM),
        ],
        out_specs=pl.BlockSpec((N, Cout, HW), lambda i: (0, 0, 0)),
        compiler_params=pltpu.CompilerParams(
            dimension_semantics=("arbitrary",)),
    )(xf, w9, gb)

    # Free minor-dim split back to NCHW.
    return out.reshape(N, Cout, H, W)


def _reference(x_nchw, weight_oihw, bias, gamma, beta, eps=0.1):
    """Pure-JAX reference with the exact module semantics (incl. conv bias)."""
    conv = jax.lax.conv_general_dilated(
        x_nchw, weight_oihw, window_strides=(1, 1), padding=((1, 1), (1, 1)),
        dimension_numbers=("NCHW", "OIHW", "NCHW"))
    conv = conv + bias[None, :, None, None]
    mean = conv.mean(axis=(0, 2, 3), keepdims=True)
    var = ((conv - mean) ** 2).mean(axis=(0, 2, 3), keepdims=True)
    xhat = (conv - mean) * jax.lax.rsqrt(var + eps)
    y = xhat * gamma[None, :, None, None] + beta[None, :, None, None]
    return jnp.maximum(y, 0.0)


if __name__ == "__main__":
    # Shapes implied by FlowPrediction(in_channels=16, out_channels=2).
    N, Cin, H, W = 2, 16, 16, 16
    Cout = 2

    key = jax.random.PRNGKey(0)
    kx, kw, kb, kg, kbe = jax.random.split(key, 5)

    x = jax.random.normal(kx, (N, Cin, H, W), dtype=jnp.float32)
    weight = 0.1 * jax.random.normal(kw, (Cout, Cin, 3, 3), dtype=jnp.float32)
    bias = 0.01 * jax.random.normal(kb, (Cout,), dtype=jnp.float32)
    gamma = 1.0 + 0.1 * jax.random.normal(kg, (Cout,), dtype=jnp.float32)
    beta = 0.05 * jax.random.normal(kbe, (Cout,), dtype=jnp.float32)

    out = flow_prediction(x, weight, bias, gamma, beta)
    out = jax.block_until_ready(out)

    ref = _reference(x, weight, bias, gamma, beta)
    np.testing.assert_allclose(np.asarray(out), np.asarray(ref),
                               rtol=2e-4, atol=2e-4)

    print("KERNEL_OK")
</pallas_src>

<mosaic_0001>
module attributes {stable_mosaic.version = 11 : i64} {
  func.func @flow_prediction_kernel(%arg0: i32, %arg1: memref<2x16x256xf32, #tpu.memory_space<vmem>>, %arg2: memref<9x2x16xf32, #tpu.memory_space<vmem>>, %arg3: memref<4xf32, #tpu.memory_space<smem>>, %arg4: memref<2x2x256xf32, #tpu.memory_space<vmem>>) attributes {dimension_semantics = [#tpu.dimension_semantics<arbitrary>], iteration_bounds = array<i64: 1>, scalar_prefetch = 0 : i64, scratch_operands = 0 : i64, tpu.core_type = #tpu.core_type<tc>, window_params = [{pipeline_mode = #tpu.pipeline_mode<synchronous>, transform_indices = @transform_0, window_bounds = array<i64: 2, 16, 256>}, {pipeline_mode = #tpu.pipeline_mode<synchronous>, transform_indices = @transform_1, window_bounds = array<i64: 9, 2, 16>}, {transform_indices = @transform_2, window_bounds = array<i64: 4>}, {pipeline_mode = #tpu.pipeline_mode<synchronous>, transform_indices = @transform_3, window_bounds = array<i64: 2, 2, 256>}]} {
    %c0 = arith.constant 0 : index
    %c0_0 = arith.constant 0 : index
    %c0_1 = arith.constant 0 : index
    %0 = vector.load %arg1[%c0, %c0_0, %c0_1] : memref<2x16x256xf32, #tpu.memory_space<vmem>>, vector<2x16x256xf32>
    %1 = tpu.iota {dimensions = array<i32: 2>} : vector<1x1x256xi32>
    %c16_i32 = arith.constant 16 : i32
    %c0_i32 = arith.constant 0 : i32
    %2 = arith.cmpi eq, %c16_i32, %c0_i32 : i32
    %c1_i32 = arith.constant 1 : i32
    %3 = arith.select %2, %c1_i32, %c16_i32 : i32
    %4 = vector.broadcast %3 : i32 to vector<1x1x256xi32>
    %5 = arith.remsi %1, %4 : vector<1x1x256xi32>
    %c0_i32_2 = arith.constant 0 : i32
    %6 = vector.broadcast %c0_i32_2 : i32 to vector<1x1x256xi32>
    %7 = arith.cmpi ne, %5, %6 : vector<1x1x256xi32>
    %c0_i32_3 = arith.constant 0 : i32
    %8 = vector.broadcast %c0_i32_3 : i32 to vector<1x1x256xi32>
    %9 = arith.cmpi slt, %5, %8 : vector<1x1x256xi32>
    %c0_i32_4 = arith.constant 0 : i32
    %10 = arith.cmpi slt, %3, %c0_i32_4 : i32
    %11 = vector.broadcast %10 : i1 to vector<1x1x256xi1>
    %12 = vector.broadcast %11 : vector<1x1x256xi1> to vector<1x1x256xi1>
    %13 = arith.xori %9, %12 : vector<1x1x256xi1>
    %14 = arith.andi %13, %7 : vector<1x1x256xi1>
    %15 = vector.broadcast %3 : i32 to vector<1x1x256xi32>
    %16 = arith.addi %5, %15 : vector<1x1x256xi32>
    %17 = arith.select %14, %16, %5 : vector<1x1x256xi1>, vector<1x1x256xi32>
    %c15_i32 = arith.constant 15 : i32
    %18 = vector.broadcast %c15_i32 : i32 to vector<1x1x256xi32>
    %19 = arith.cmpi ne, %17, %18 : vector<1x1x256xi32>
    %cst = arith.constant 0.000000e+00 : f32
    %20 = vector.shape_cast %19 : vector<1x1x256xi1> to vector<1x1x256xi1>
    %21 = vector.broadcast %20 : vector<1x1x256xi1> to vector<2x16x256xi1>
    %22 = vector.broadcast %cst : f32 to vector<2x16x256xf32>
    %23 = arith.select %21, %0, %22 : vector<2x16x256xi1>, vector<2x16x256xf32>
    %c0_i32_5 = arith.constant 0 : i32
    %24 = vector.broadcast %c0_i32_5 : i32 to vector<1x1x256xi32>
    %25 = arith.cmpi ne, %17, %24 : vector<1x1x256xi32>
    %cst_6 = arith.constant 0.000000e+00 : f32
    %26 = vector.shape_cast %25 : vector<1x1x256xi1> to vector<1x1x256xi1>
    %27 = vector.broadcast %26 : vector<1x1x256xi1> to vector<2x16x256xi1>
    %28 = vector.broadcast %cst_6 : f32 to vector<2x16x256xf32>
    %29 = arith.select %27, %0, %28 : vector<2x16x256xi1>, vector<2x16x256xf32>
    %c16_i32_7 = arith.constant 16 : i32
    %30 = vector.broadcast %c16_i32_7 : i32 to vector<1x1x256xi32>
    %31 = arith.cmpi sge, %1, %30 : vector<1x1x256xi32>
    %32 = vector.shape_cast %31 : vector<1x1x256xi1> to vector<1x1x256xi1>
    %33 = vector.broadcast %32 : vector<1x1x256xi1> to vector<2x16x256xi1>
    %c240_i32 = arith.constant 240 : i32
    %34 = vector.broadcast %c240_i32 : i32 to vector<1x1x256xi32>
    %35 = arith.cmpi slt, %1, %34 : vector<1x1x256xi32>
    %36 = vector.shape_cast %35 : vector<1x1x256xi1> to vector<1x1x256xi1>
    %37 = vector.broadcast %36 : vector<1x1x256xi1> to vector<2x16x256xi1>
    %cst_8 = arith.constant 0.000000e+00 : f32
    %38 = vector.broadcast %cst_8 : f32 to vector<2x256xf32>
    %cst_9 = arith.constant 0.000000e+00 : f32
    %39 = vector.broadcast %cst_9 : f32 to vector<2x256xf32>
    %c17_i32 = arith.constant 17 : i32
    %40 = tpu.dynamic_rotate %23 by %c17_i32 dim 2 : vector<2x16x256xf32>, i32 -> vector<2x16x256xf32>
    %cst_10 = arith.constant 0.000000e+00 : f32
    %41 = vector.broadcast %cst_10 : f32 to vector<2x16x256xf32>
    %42 = arith.select %33, %40, %41 : vector<2x16x256xi1>, vector<2x16x256xf32>
    %c0_11 = arith.constant 0 : index
    %c0_12 = arith.constant 0 : index
    %c0_13 = arith.constant 0 : index
    %43 = vector.load %arg2[%c0_11, %c0_12, %c0_13] : memref<9x2x16xf32, #tpu.memory_space<vmem>>, vector<1x2x16xf32>
    %44 = vector.shape_cast %43 : vector<1x2x16xf32> to vector<2x16xf32>
    %45 = vector.extract_strided_slice %42 {offsets = [0, 0, 0], sizes = [1, 16, 256], strides = [1, 1, 1]} : vector<2x16x256xf32> to vector<1x16x256xf32>
    %46 = vector.shape_cast %45 : vector<1x16x256xf32> to vector<16x256xf32>
    %cst_14 = arith.constant dense<0.000000e+00> : vector<2x256xf32>
    %47 = tpu.matmul %44, %46, %cst_14 {dimension_numbers = #tpu.dot_dimension_numbers<[1], [0], [0], [1], [0, 0, 1, 1], [], []>} : vector<2x16xf32>, vector<16x256xf32>, vector<2x256xf32> -> vector<2x256xf32>
    %48 = arith.addf %38, %47 : vector<2x256xf32>
    %49 = vector.extract_strided_slice %42 {offsets = [1, 0, 0], sizes = [1, 16, 256], strides = [1, 1, 1]} : vector<2x16x256xf32> to vector<1x16x256xf32>
    %50 = vector.shape_cast %49 : vector<1x16x256xf32> to vector<16x256xf32>
    %cst_15 = arith.constant dense<0.000000e+00> : vector<2x256xf32>
    %51 = tpu.matmul %44, %50, %cst_15 {dimension_numbers = #tpu.dot_dimension_numbers<[1], [0], [0], [1], [0, 0, 1, 1], [], []>} : vector<2x16xf32>, vector<16x256xf32>, vector<2x256xf32> -> vector<2x256xf32>
    %52 = arith.addf %39, %51 : vector<2x256xf32>
    %c16_i32_16 = arith.constant 16 : i32
    %53 = tpu.dynamic_rotate %0 by %c16_i32_16 dim 2 : vector<2x16x256xf32>, i32 -> vector<2x16x256xf32>
    %cst_17 = arith.constant 0.000000e+00 : f32
    %54 = vector.broadcast %cst_17 : f32 to vector<2x16x256xf32>
    %55 = arith.select %33, %53, %54 : vector<2x16x256xi1>, vector<2x16x256xf32>
    %c1 = arith.constant 1 : index
    %c0_18 = arith.constant 0 : index
    %c0_19 = arith.constant 0 : index
    %56 = vector.load %arg2[%c1, %c0_18, %c0_19] : memref<9x2x16xf32, #tpu.memory_space<vmem>>, vector<1x2x16xf32>
    %57 = vector.shape_cast %56 : vector<1x2x16xf32> to vector<2x16xf32>
    %58 = vector.extract_strided_slice %55 {offsets = [0, 0, 0], sizes = [1, 16, 256], strides = [1, 1, 1]} : vector<2x16x256xf32> to vector<1x16x256xf32>
    %59 = vector.shape_cast %58 : vector<1x16x256xf32> to vector<16x256xf32>
    %cst_20 = arith.constant dense<0.000000e+00> : vector<2x256xf32>
    %60 = tpu.matmul %57, %59, %cst_20 {dimension_numbers = #tpu.dot_dimension_numbers<[1], [0], [0], [1], [0, 0, 1, 1], [], []>} : vector<2x16xf32>, vector<16x256xf32>, vector<2x256xf32> -> vector<2x256xf32>
    %61 = arith.addf %48, %60 : vector<2x256xf32>
    %62 = vector.extract_strided_slice %55 {offsets = [1, 0, 0], sizes = [1, 16, 256], strides = [1, 1, 1]} : vector<2x16x256xf32> to vector<1x16x256xf32>
    %63 = vector.shape_cast %62 : vector<1x16x256xf32> to vector<16x256xf32>
    %cst_21 = arith.constant dense<0.000000e+00> : vector<2x256xf32>
    %64 = tpu.matmul %57, %63, %cst_21 {dimension_numbers = #tpu.dot_dimension_numbers<[1], [0], [0], [1], [0, 0, 1, 1], [], []>} : vector<2x16xf32>, vector<16x256xf32>, vector<2x256xf32> -> vector<2x256xf32>
    %65 = arith.addf %52, %64 : vector<2x256xf32>
    %c15_i32_22 = arith.constant 15 : i32
    %66 = tpu.dynamic_rotate %29 by %c15_i32_22 dim 2 : vector<2x16x256xf32>, i32 -> vector<2x16x256xf32>
    %cst_23 = arith.constant 0.000000e+00 : f32
    %67 = vector.broadcast %cst_23 : f32 to vector<2x16x256xf32>
    %68 = arith.select %33, %66, %67 : vector<2x16x256xi1>, vector<2x16x256xf32>
    %c2 = arith.constant 2 : index
    %c0_24 = arith.constant 0 : index
    %c0_25 = arith.constant 0 : index
    %69 = vector.load %arg2[%c2, %c0_24, %c0_25] : memref<9x2x16xf32, #tpu.memory_space<vmem>>, vector<1x2x16xf32>
    %70 = vector.shape_cast %69 : vector<1x2x16xf32> to vector<2x16xf32>
    %71 = vector.extract_strided_slice %68 {offsets = [0, 0, 0], sizes = [1, 16, 256], strides = [1, 1, 1]} : vector<2x16x256xf32> to vector<1x16x256xf32>
    %72 = vector.shape_cast %71 : vector<1x16x256xf32> to vector<16x256xf32>
    %cst_26 = arith.constant dense<0.000000e+00> : vector<2x256xf32>
    %73 = tpu.matmul %70, %72, %cst_26 {dimension_numbers = #tpu.dot_dimension_numbers<[1], [0], [0], [1], [0, 0, 1, 1], [], []>} : vector<2x16xf32>, vector<16x256xf32>, vector<2x256xf32> -> vector<2x256xf32>
    %74 = arith.addf %61, %73 : vector<2x256xf32>
    %75 = vector.extract_strided_slice %68 {offsets = [1, 0, 0], sizes = [1, 16, 256], strides = [1, 1, 1]} : vector<2x16x256xf32> to vector<1x16x256xf32>
    %76 = vector.shape_cast %75 : vector<1x16x256xf32> to vector<16x256xf32>
    %cst_27 = arith.constant dense<0.000000e+00> : vector<2x256xf32>
    %77 = tpu.matmul %70, %76, %cst_27 {dimension_numbers = #tpu.dot_dimension_numbers<[1], [0], [0], [1], [0, 0, 1, 1], [], []>} : vector<2x16xf32>, vector<16x256xf32>, vector<2x256xf32> -> vector<2x256xf32>
    %78 = arith.addf %65, %77 : vector<2x256xf32>
    %c1_i32_28 = arith.constant 1 : i32
    %79 = tpu.dynamic_rotate %23 by %c1_i32_28 dim 2 : vector<2x16x256xf32>, i32 -> vector<2x16x256xf32>
    %c3 = arith.constant 3 : index
    %c0_29 = arith.constant 0 : index
    %c0_30 = arith.constant 0 : index
    %80 = vector.load %arg2[%c3, %c0_29, %c0_30] : memref<9x2x16xf32, #tpu.memory_space<vmem>>, vector<1x2x16xf32>
    %81 = vector.shape_cast %80 : vector<1x2x16xf32> to vector<2x16xf32>
    %82 = vector.extract_strided_slice %79 {offsets = [0, 0, 0], sizes = [1, 16, 256], strides = [1, 1, 1]} : vector<2x16x256xf32> to vector<1x16x256xf32>
    %83 = vector.shape_cast %82 : vector<1x16x256xf32> to vector<16x256xf32>
    %cst_31 = arith.constant dense<0.000000e+00> : vector<2x256xf32>
    %84 = tpu.matmul %81, %83, %cst_31 {dimension_numbers = #tpu.dot_dimension_numbers<[1], [0], [0], [1], [0, 0, 1, 1], [], []>} : vector<2x16xf32>, vector<16x256xf32>, vector<2x256xf32> -> vector<2x256xf32>
    %85 = arith.addf %74, %84 : vector<2x256xf32>
    %86 = vector.extract_strided_slice %79 {offsets = [1, 0, 0], sizes = [1, 16, 256], strides = [1, 1, 1]} : vector<2x16x256xf32> to vector<1x16x256xf32>
    %87 = vector.shape_cast %86 : vector<1x16x256xf32> to vector<16x256xf32>
    %cst_32 = arith.constant dense<0.000000e+00> : vector<2x256xf32>
    %88 = tpu.matmul %81, %87, %cst_32 {dimension_numbers = #tpu.dot_dimension_numbers<[1], [0], [0], [1], [0, 0, 1, 1], [], []>} : vector<2x16xf32>, vector<16x256xf32>, vector<2x256xf32> -> vector<2x256xf32>
    %89 = arith.addf %78, %88 : vector<2x256xf32>
    %c4 = arith.constant 4 : index
    %c0_33 = arith.constant 0 : index
    %c0_34 = arith.constant 0 : index
    %90 = vector.load %arg2[%c4, %c0_33, %c0_34] : memref<9x2x16xf32, #tpu.memory_space<vmem>>, vector<1x2x16xf32>
    %91 = vector.shape_cast %90 : vector<1x2x16xf32> to vector<2x16xf32>
    %92 = vector.extract_strided_slice %0 {offsets = [0, 0, 0], sizes = [1, 16, 256], strides = [1, 1, 1]} : vector<2x16x256xf32> to vector<1x16x256xf32>
    %93 = vector.shape_cast %92 : vector<1x16x256xf32> to vector<16x256xf32>
    %cst_35 = arith.constant dense<0.000000e+00> : vector<2x256xf32>
    %94 = tpu.matmul %91, %93, %cst_35 {dimension_numbers = #tpu.dot_dimension_numbers<[1], [0], [0], [1], [0, 0, 1, 1], [], []>} : vector<2x16xf32>, vector<16x256xf32>, vector<2x256xf32> -> vector<2x256xf32>
    %95 = arith.addf %85, %94 : vector<2x256xf32>
    %96 = vector.extract_strided_slice %0 {offsets = [1, 0, 0], sizes = [1, 16, 256], strides = [1, 1, 1]} : vector<2x16x256xf32> to vector<1x16x256xf32>
    %97 = vector.shape_cast %96 : vector<1x16x256xf32> to vector<16x256xf32>
    %cst_36 = arith.constant dense<0.000000e+00> : vector<2x256xf32>
    %98 = tpu.matmul %91, %97, %cst_36 {dimension_numbers = #tpu.dot_dimension_numbers<[1], [0], [0], [1], [0, 0, 1, 1], [], []>} : vector<2x16xf32>, vector<16x256xf32>, vector<2x256xf32> -> vector<2x256xf32>
    %99 = arith.addf %89, %98 : vector<2x256xf32>
    %c255_i32 = arith.constant 255 : i32
    %100 = tpu.dynamic_rotate %29 by %c255_i32 dim 2 : vector<2x16x256xf32>, i32 -> vector<2x16x256xf32>
    %c5 = arith.constant 5 : index
    %c0_37 = arith.constant 0 : index
    %c0_38 = arith.constant 0 : index
    %101 = vector.load %arg2[%c5, %c0_37, %c0_38] : memref<9x2x16xf32, #tpu.memory_space<vmem>>, vector<1x2x16xf32>
    %102 = vector.shape_cast %101 : vector<1x2x16xf32> to vector<2x16xf32>
    %103 = vector.extract_strided_slice %100 {offsets = [0, 0, 0], sizes = [1, 16, 256], strides = [1, 1, 1]} : vector<2x16x256xf32> to vector<1x16x256xf32>
    %104 = vector.shape_cast %103 : vector<1x16x256xf32> to vector<16x256xf32>
    %cst_39 = arith.constant dense<0.000000e+00> : vector<2x256xf32>
    %105 = tpu.matmul %102, %104, %cst_39 {dimension_numbers = #tpu.dot_dimension_numbers<[1], [0], [0], [1], [0, 0, 1, 1], [], []>} : vector<2x16xf32>, vector<16x256xf32>, vector<2x256xf32> -> vector<2x256xf32>
    %106 = arith.addf %95, %105 : vector<2x256xf32>
    %107 = vector.extract_strided_slice %100 {offsets = [1, 0, 0], sizes = [1, 16, 256], strides = [1, 1, 1]} : vector<2x16x256xf32> to vector<1x16x256xf32>
    %108 = vector.shape_cast %107 : vector<1x16x256xf32> to vector<16x256xf32>
    %cst_40 = arith.constant dense<0.000000e+00> : vector<2x256xf32>
    %109 = tpu.matmul %102, %108, %cst_40 {dimension_numbers = #tpu.dot_dimension_numbers<[1], [0], [0], [1], [0, 0, 1, 1], [], []>} : vector<2x16xf32>, vector<16x256xf32>, vector<2x256xf32> -> vector<2x256xf32>
    %110 = arith.addf %99, %109 : vector<2x256xf32>
    %c241_i32 = arith.constant 241 : i32
    %111 = tpu.dynamic_rotate %23 by %c241_i32 dim 2 : vector<2x16x256xf32>, i32 -> vector<2x16x256xf32>
    %cst_41 = arith.constant 0.000000e+00 : f32
    %112 = vector.broadcast %cst_41 : f32 to vector<2x16x256xf32>
    %113 = arith.select %37, %111, %112 : vector<2x16x256xi1>, vector<2x16x256xf32>
    %c6 = arith.constant 6 : index
    %c0_42 = arith.constant 0 : index
    %c0_43 = arith.constant 0 : index
    %114 = vector.load %arg2[%c6, %c0_42, %c0_43] : memref<9x2x16xf32, #tpu.memory_space<vmem>>, vector<1x2x16xf32>
    %115 = vector.shape_cast %114 : vector<1x2x16xf32> to vector<2x16xf32>
    %116 = vector.extract_strided_slice %113 {offsets = [0, 0, 0], sizes = [1, 16, 256], strides = [1, 1, 1]} : vector<2x16x256xf32> to vector<1x16x256xf32>
    %117 = vector.shape_cast %116 : vector<1x16x256xf32> to vector<16x256xf32>
    %cst_44 = arith.constant dense<0.000000e+00> : vector<2x256xf32>
    %118 = tpu.matmul %115, %117, %cst_44 {dimension_numbers = #tpu.dot_dimension_numbers<[1], [0], [0], [1], [0, 0, 1, 1], [], []>} : vector<2x16xf32>, vector<16x256xf32>, vector<2x256xf32> -> vector<2x256xf32>
    %119 = arith.addf %106, %118 : vector<2x256xf32>
    %120 = vector.extract_strided_slice %113 {offsets = [1, 0, 0], sizes = [1, 16, 256], strides = [1, 1, 1]} : vector<2x16x256xf32> to vector<1x16x256xf32>
    %121 = vector.shape_cast %120 : vector<1x16x256xf32> to vector<16x256xf32>
    %cst_45 = arith.constant dense<0.000000e+00> : vector<2x256xf32>
    %122 = tpu.matmul %115, %121, %cst_45 {dimension_numbers = #tpu.dot_dimension_numbers<[1], [0], [0], [1], [0, 0, 1, 1], [], []>} : vector<2x16xf32>, vector<16x256xf32>, vector<2x256xf32> -> vector<2x256xf32>
    %123 = arith.addf %110, %122 : vector<2x256xf32>
    %c240_i32_46 = arith.constant 240 : i32
    %124 = tpu.dynamic_rotate %0 by %c240_i32_46 dim 2 : vector<2x16x256xf32>, i32 -> vector<2x16x256xf32>
    %cst_47 = arith.constant 0.000000e+00 : f32
    %125 = vector.broadcast %cst_47 : f32 to vector<2x16x256xf32>
    %126 = arith.select %37, %124, %125 : vector<2x16x256xi1>, vector<2x16x256xf32>
    %c7 = arith.constant 7 : index
    %c0_48 = arith.constant 0 : index
    %c0_49 = arith.constant 0 : index
    %127 = vector.load %arg2[%c7, %c0_48, %c0_49] : memref<9x2x16xf32, #tpu.memory_space<vmem>>, vector<1x2x16xf32>
    %128 = vector.shape_cast %127 : vector<1x2x16xf32> to vector<2x16xf32>
    %129 = vector.extract_strided_slice %126 {offsets = [0, 0, 0], sizes = [1, 16, 256], strides = [1, 1, 1]} : vector<2x16x256xf32> to vector<1x16x256xf32>
    %130 = vector.shape_cast %129 : vector<1x16x256xf32> to vector<16x256xf32>
    %cst_50 = arith.constant dense<0.000000e+00> : vector<2x256xf32>
    %131 = tpu.matmul %128, %130, %cst_50 {dimension_numbers = #tpu.dot_dimension_numbers<[1], [0], [0], [1], [0, 0, 1, 1], [], []>} : vector<2x16xf32>, vector<16x256xf32>, vector<2x256xf32> -> vector<2x256xf32>
    %132 = arith.addf %119, %131 : vector<2x256xf32>
    %133 = vector.extract_strided_slice %126 {offsets = [1, 0, 0], sizes = [1, 16, 256], strides = [1, 1, 1]} : vector<2x16x256xf32> to vector<1x16x256xf32>
    %134 = vector.shape_cast %133 : vector<1x16x256xf32> to vector<16x256xf32>
    %cst_51 = arith.constant dense<0.000000e+00> : vector<2x256xf32>
    %135 = tpu.matmul %128, %134, %cst_51 {dimension_numbers = #tpu.dot_dimension_numbers<[1], [0], [0], [1], [0, 0, 1, 1], [], []>} : vector<2x16xf32>, vector<16x256xf32>, vector<2x256xf32> -> vector<2x256xf32>
    %136 = arith.addf %123, %135 : vector<2x256xf32>
    %c239_i32 = arith.constant 239 : i32
    %137 = tpu.dynamic_rotate %29 by %c239_i32 dim 2 : vector<2x16x256xf32>, i32 -> vector<2x16x256xf32>
    %cst_52 = arith.constant 0.000000e+00 : f32
    %138 = vector.broadcast %cst_52 : f32 to vector<2x16x256xf32>
    %139 = arith.select %37, %137, %138 : vector<2x16x256xi1>, vector<2x16x256xf32>
    %c8 = arith.constant 8 : index
    %c0_53 = arith.constant 0 : index
    %c0_54 = arith.constant 0 : index
    %140 = vector.load %arg2[%c8, %c0_53, %c0_54] : memref<9x2x16xf32, #tpu.memory_space<vmem>>, vector<1x2x16xf32>
    %141 = vector.shape_cast %140 : vector<1x2x16xf32> to vector<2x16xf32>
    %142 = vector.extract_strided_slice %139 {offsets = [0, 0, 0], sizes = [1, 16, 256], strides = [1, 1, 1]} : vector<2x16x256xf32> to vector<1x16x256xf32>
    %143 = vector.shape_cast %142 : vector<1x16x256xf32> to vector<16x256xf32>
    %cst_55 = arith.constant dense<0.000000e+00> : vector<2x256xf32>
    %144 = tpu.matmul %141, %143, %cst_55 {dimension_numbers = #tpu.dot_dimension_numbers<[1], [0], [0], [1], [0, 0, 1, 1], [], []>} : vector<2x16xf32>, vector<16x256xf32>, vector<2x256xf32> -> vector<2x256xf32>
    %145 = arith.addf %132, %144 : vector<2x256xf32>
    %146 = vector.extract_strided_slice %139 {offsets = [1, 0, 0], sizes = [1, 16, 256], strides = [1, 1, 1]} : vector<2x16x256xf32> to vector<1x16x256xf32>
    %147 = vector.shape_cast %146 : vector<1x16x256xf32> to vector<16x256xf32>
    %cst_56 = arith.constant dense<0.000000e+00> : vector<2x256xf32>
    %148 = tpu.matmul %141, %147, %cst_56 {dimension_numbers = #tpu.dot_dimension_numbers<[1], [0], [0], [1], [0, 0, 1, 1], [], []>} : vector<2x16xf32>, vector<16x256xf32>, vector<2x256xf32> -> vector<2x256xf32>
    %149 = arith.addf %136, %148 : vector<2x256xf32>
    %cst_57 = arith.constant dense<0.000000e+00> : vector<2xf32>
    %150 = vector.multi_reduction <add>, %145, %cst_57 [1] : vector<2x256xf32> to vector<2xf32>
    %151 = vector.shape_cast %150 : vector<2xf32> to vector<2x1xf32>
    %152 = arith.mulf %145, %145 : vector<2x256xf32>
    %cst_58 = arith.constant dense<0.000000e+00> : vector<2xf32>
    %153 = vector.multi_reduction <add>, %152, %cst_58 [1] : vector<2x256xf32> to vector<2xf32>
    %154 = vector.shape_cast %153 : vector<2xf32> to vector<2x1xf32>
    %cst_59 = arith.constant dense<0.000000e+00> : vector<2xf32>
    %155 = vector.multi_reduction <add>, %149, %cst_59 [1] : vector<2x256xf32> to vector<2xf32>
    %156 = vector.shape_cast %155 : vector<2xf32> to vector<2x1xf32>
    %157 = arith.addf %151, %156 : vector<2x1xf32>
    %158 = arith.mulf %149, %149 : vector<2x256xf32>
    %cst_60 = arith.constant dense<0.000000e+00> : vector<2xf32>
    %159 = vector.multi_reduction <add>, %158, %cst_60 [1] : vector<2x256xf32> to vector<2xf32>
    %160 = vector.shape_cast %159 : vector<2xf32> to vector<2x1xf32>
    %161 = arith.addf %154, %160 : vector<2x1xf32>
    %cst_61 = arith.constant 0.001953125 : f32
    %162 = vector.broadcast %cst_61 : f32 to vector<2x1xf32>
    %163 = arith.mulf %157, %162 : vector<2x1xf32>
    %cst_62 = arith.constant 0.001953125 : f32
    %164 = vector.broadcast %cst_62 : f32 to vector<2x1xf32>
    %165 = arith.mulf %161, %164 : vector<2x1xf32>
    %166 = arith.mulf %163, %163 : vector<2x1xf32>
    %167 = arith.subf %165, %166 : vector<2x1xf32>
    %c0_63 = arith.constant 0 : index
    %168 = memref.load %arg3[%c0_63] : memref<4xf32, #tpu.memory_space<smem>>
    %169 = vector.broadcast %168 : f32 to vector<1x1xf32>
    %c1_64 = arith.constant 1 : index
    %170 = memref.load %arg3[%c1_64] : memref<4xf32, #tpu.memory_space<smem>>
    %171 = vector.broadcast %170 : f32 to vector<1x1xf32>
    %172 = tpu.concatenate %169, %171 in 0 : vector<1x1xf32>, vector<1x1xf32> -> vector<2x1xf32>
    %c2_65 = arith.constant 2 : index
    %173 = memref.load %arg3[%c2_65] : memref<4xf32, #tpu.memory_space<smem>>
    %174 = vector.broadcast %173 : f32 to vector<1x1xf32>
    %c3_66 = arith.constant 3 : index
    %175 = memref.load %arg3[%c3_66] : memref<4xf32, #tpu.memory_space<smem>>
    %176 = vector.broadcast %175 : f32 to vector<1x1xf32>
    %177 = tpu.concatenate %174, %176 in 0 : vector<1x1xf32>, vector<1x1xf32> -> vector<2x1xf32>
    %cst_67 = arith.constant 1.000000e-01 : f32
    %178 = vector.broadcast %cst_67 : f32 to vector<2x1xf32>
    %179 = arith.addf %167, %178 : vector<2x1xf32>
    %180 = math.rsqrt %179 : vector<2x1xf32>
    %181 = arith.mulf %172, %180 : vector<2x1xf32>
    %182 = arith.mulf %163, %181 : vector<2x1xf32>
    %183 = arith.subf %177, %182 : vector<2x1xf32>
    %184 = vector.broadcast %181 : vector<2x1xf32> to vector<2x256xf32>
    %185 = arith.mulf %145, %184 : vector<2x256xf32>
    %186 = vector.broadcast %183 : vector<2x1xf32> to vector<2x256xf32>
    %187 = arith.addf %185, %186 : vector<2x256xf32>
    %cst_68 = arith.constant 0.000000e+00 : f32
    %188 = vector.broadcast %cst_68 : f32 to vector<2x256xf32>
    %189 = arith.maximumf %187, %188 : vector<2x256xf32>
    %c0_69 = arith.constant 0 : index
    %c0_70 = arith.constant 0 : index
    %c0_71 = arith.constant 0 : index
    %190 = vector.load %arg4[%c0_69, %c0_70, %c0_71] : memref<2x2x256xf32, #tpu.memory_space<vmem>>, vector<1x2x256xf32>
    %191 = vector.shape_cast %190 : vector<1x2x256xf32> to vector<2x256xf32>
    %192 = vector.shape_cast %189 : vector<2x256xf32> to vector<1x2x256xf32>
    tpu.vector_store %arg4[%c0_69, %c0_70, %c0_71], %192 {strides = array<i32>} : memref<2x2x256xf32, #tpu.memory_space<vmem>>, vector<1x2x256xf32>,
    %193 = vector.broadcast %181 : vector<2x1xf32> to vector<2x256xf32>
    %194 = arith.mulf %149, %193 : vector<2x256xf32>
    %195 = vector.broadcast %183 : vector<2x1xf32> to vector<2x256xf32>
    %196 = arith.addf %194, %195 : vector<2x256xf32>
    %cst_72 = arith.constant 0.000000e+00 : f32
    %197 = vector.broadcast %cst_72 : f32 to vector<2x256xf32>
    %198 = arith.maximumf %196, %197 : vector<2x256xf32>
    %c1_73 = arith.constant 1 : index
    %c0_74 = arith.constant 0 : index
    %c0_75 = arith.constant 0 : index
    %199 = vector.load %arg4[%c1_73, %c0_74, %c0_75] : memref<2x2x256xf32, #tpu.memory_space<vmem>>, vector<1x2x256xf32>
    %200 = vector.shape_cast %199 : vector<1x2x256xf32> to vector<2x256xf32>
    %201 = vector.shape_cast %198 : vector<2x256xf32> to vector<1x2x256xf32>
    tpu.vector_store %arg4[%c1_73, %c0_74, %c0_75], %201 {strides = array<i32>} : memref<2x2x256xf32, #tpu.memory_space<vmem>>, vector<1x2x256xf32>,
    return
  }
  func.func @transform_0(%arg0: i32) -> (i32, i32, i32) {
    %c0_i32 = arith.constant 0 : i32
    %c0_i32_0 = arith.constant 0 : i32
    %c0_i32_1 = arith.constant 0 : i32
    %c0_i32_2 = arith.constant 0 : i32
    return %c0_i32, %c0_i32_0, %c0_i32_1 : i32, i32, i32
  }
  func.func @transform_1(%arg0: i32) -> (i32, i32, i32) {
    %c0_i32 = arith.constant 0 : i32
    %c0_i32_0 = arith.constant 0 : i32
    %c0_i32_1 = arith.constant 0 : i32
    %c0_i32_2 = arith.constant 0 : i32
    return %c0_i32, %c0_i32_0, %c0_i32_1 : i32, i32, i32
  }
  func.func @transform_2(%arg0: i32) -> i32 {
    %c0_i32 = arith.constant 0 : i32
    %c0_i32_0 = arith.constant 0 : i32
    return %c0_i32 : i32
  }
  func.func @transform_3(%arg0: i32) -> (i32, i32, i32) {
    %c0_i32 = arith.constant 0 : i32
    %c0_i32_0 = arith.constant 0 : i32
    %c0_i32_1 = arith.constant 0 : i32
    %c0_i32_2 = arith.constant 0 : i32
    return %c0_i32, %c0_i32_0, %c0_i32_1 : i32, i32, i32
  }
}

</mosaic_0001>

<bundles_post_ra>
// kernel: tpu_custom_call.1
= control target key start
LH: loop header
LB: loop body
LE: loop exit
PB: predicated region body
PF: predicated region fallthrough
CT: control target
= control target key end

     0   :  { %8 = vsyncpa [#allocation3], 0  ;;  %s2667_s0 = inlined_call_operand.hbm [shape: f32[2,16,256], index: 0, kind: input, shape index: {}]   ;;  %s2668_s1 = inlined_call_operand.hbm [shape: f32[9,2,16], index: 1, kind: input, shape index: {}]   ;;  %s2669_s2 = inlined_call_operand.vmem [shape: f32[4], index: 2, kind: input, shape index: {}]   ;;  %s2670_s3 = inlined_call_operand.hbm [shape: f32[2,2,256], index: 3, kind: output, shape index: {}]  }
   0x1   :  { %9 = vsyncpa [#allocation7], 0 }
   0x2   :  { %10 = vsyncpa [#allocation5], 0 }
   0x3   :  { %11 = vsyncpa [#allocation4], 0  ;;  %s2275_s12 = smov [#allocation2]   ;;  %s2189_s16 = scalar_lea.hbm %s2667_s0, 1024 }
   0x4   :  { %s17_s13 = sshll.u32 %s2275_s12, 4  ;;  %p2190_p0 = scmp.ne.s32.totalorder %s2667_s0, %s2189_s16  ;;  %s18_s13 = int_to_ptr.vmem [resolvable:$true] %s17_s13 }
   0x5   :  { %p2193_p1 = scmp.lt.u32.totalorder %s2189_s16, %s2667_s0 }
   0x7   :  { %p2195_p2 = pnand %p2193_p1, %p2190_p0 }
   0x9   :  { %2198 = shalt.err (!%p2195_p2)
}
   0xa   :  { %s2199_s21 = scalar_lea.vmem %s18_s13, 1024  ;;  %p2204_p4 = scmp.lt.s32.totalorder %s18_s13, %s18_s13 }
   0xb   :  { %p2200_p3 = scmp.ne.s32.totalorder %s18_s13, %s2199_s21  ;;  %p2205_p5 = scmp.lt.s32.totalorder %s2199_s21, %s2199_s21 }
   0xd   :  { %p2206_p6 = por %p2205_p5, %p2204_p4 }
   0xf   :  { %p2207_p7 = pnand %p2206_p6, %p2200_p3 }
  0x11   :  { %2210 = shalt.err (!%p2207_p7)
}
  0x12   :  { %s2276_s22 = smov 256   ;;  %s2277_s23 = smov 16  }
  0x13   :  { %23 = dma.hbm_to_vmem [thread:$0]  %s2667_s0, 1024, %s18_s13, [#allocation3], %s2276_s22, %s2276_s22, %s2277_s23  }
  0x14   :  { %s2278_s26 = smov [#allocation6]   ;;  %s2211_s30 = scalar_lea.hbm %s2668_s1, 288 }
  0x15   :  { %s29_s27 = sshll.u32 %s2278_s26, 4  ;;  %p2212_p8 = scmp.ne.s32.totalorder %s2668_s1, %s2211_s30  ;;  %s30_s27 = int_to_ptr.vmem [resolvable:$true] %s29_s27 }
  0x16   :  { %p2215_p9 = scmp.lt.u32.totalorder %s2211_s30, %s2668_s1 }
  0x18   :  { %p2217_p10 = pnand %p2215_p9, %p2212_p8 }
  0x1a   :  { %2220 = shalt.err (!%p2217_p10)
}
  0x1b   :  { %s2221_s8 = scalar_lea.vmem %s30_s27, 288  ;;  %p2226_p12 = scmp.lt.s32.totalorder %s30_s27, %s30_s27 }
  0x1c   :  { %p2222_p11 = scmp.ne.s32.totalorder %s30_s27, %s2221_s8  ;;  %p2227_p13 = scmp.lt.s32.totalorder %s2221_s8, %s2221_s8 }
  0x1e   :  { %p2228_p0 = por %p2227_p13, %p2226_p12 }
  0x20   :  { %p2229_p1 = pnand %p2228_p0, %p2222_p11 }
  0x22   :  { %2232 = shalt.err (!%p2229_p1)
}
  0x23   :  { %s2279_s0 = smov 32   ;;  %s2280_s9 = smov 2  }
  0x24   :  { %35 = dma.hbm_to_vmem [thread:$0]  %s2668_s1, 288, %s30_s27, [#allocation7], %s2279_s0, %s2279_s0, %s2280_s9  }
  0x25   :  { %s42_s14 = sshll.u32 %s2669_s2, 4  ;;  %s43_s14 = int_to_ptr.vmem [resolvable:$true] %s42_s14 }
  0x26   :  { %s2233_s15 = scalar_lea.vmem %s43_s14, 16  ;;  %p2238_p3 = scmp.lt.s32.totalorder %s43_s14, %s43_s14 }
  0x27   :  { %p2234_p2 = scmp.ne.s32.totalorder %s43_s14, %s2233_s15  ;;  %p2239_p4 = scmp.lt.s32.totalorder %s2233_s15, %s2233_s15 }
  0x29   :  { %p2240_p5 = por %p2239_p4, %p2238_p3 }
  0x2b   :  { %p2241_p6 = pnand %p2240_p5, %p2234_p2 }
  0x2d   :  { %2244 = shalt.err (!%p2241_p6)
}
  0x2e   :  { %s2281_s16 = smov [#allocation8]  }
  0x2f   :  { %45 = dma.vmem_to_smem %s43_s14, 16, %s2281_s16, [#allocation5]  }
  0x30   :  { %2267 = dma.done.wait [#allocation3], 1024  }
  0x31   :  { %2268 = vsyncadd [#allocation3], 4294966272 }
  0x32   :  { %2269 = dma.done.wait [#allocation7], 288  }
  0x33   :  { %2270 = vsyncadd [#allocation7], 4294967008 }
  0x34   :  { %2271 = dma.done.wait [#allocation5], 16  }
  0x35   :  { %2272 = vsyncadd [#allocation5], 4294967280 }
  0x36   :  { %55 = sfence }
  0x37   :  { %v2342_v0 = vld [vmem:[#allocation2 + $0x8] sm:$0xff]  ;;  %v2344_v1 = vld [vmem:[#allocation2 + $0x18] sm:$0xff]  ;;  %v2346_v2 = vld [vmem:[#allocation2] sm:$0xff]  ;;  %v64_v3 = vlaneseq  ;;  %v2282_v16 = vmov 0.0   ;;  %s2283_s1 = smov 17   ;;  %s2284_s2 = smov 15  }
  0x38   :  { %v2350_v4 = vpack.i.bf16 %v2344_v1, %v2342_v0  ;;  %v2352_v5 = vld [vmem:[#allocation2 + $0x10] sm:$0xff]  ;;  %v2354_v6 = vld [vmem:[#allocation2 + $0x28] sm:$0xff]  ;;  %v2356_v7 = vld [vmem:[#allocation2 + $0x38] sm:$0xff]  ;;  %268 = vmatprep.mubr.f32.mxu0 %v2282_v16  ;;  %413 = vmatprep.mubr.f32.mxu1 %v2282_v16  ;;  %s2285_s17 = smov 1   ;;  %v1928_v43 = vpack.c.bf16 %v2344_v1, %v2342_v0  ;;  %s2286_s18 = smov 127   ;;  %vm200_vm7 = vcmask 130048  }
  0x39   :  { %v2360_v8 = vpack.i.bf16 %v2352_v5, %v2346_v2  ;;  %v2362_v9 = vld [vmem:[#allocation2 + $0x20] sm:$0xff]  ;;  %v2364_v10 = vld [vmem:[#allocation2 + $0x30] sm:$0xff]  ;;  %v2366_v11 = vand.u32 127, %v64_v3  ;;  %v2372_v12 = vpack.i.bf16 %v2356_v7, %v2354_v6  ;;  %v1930_v44 = vpack.c.bf16 %v2352_v5, %v2346_v2  ;;  %s2287_s19 = smov 113   ;;  %s2288_s20 = smov 112  }
  0x3a   :  { %2036 = vrot.lane.b32.xlu1 %v2350_v4, %s2277_s23  ;;  %v2378_v13 = vpack.i.bf16 %v2364_v10, %v2362_v9  ;;  %v1932_v45 = vpack.c.bf16 %v2356_v7, %v2354_v6  ;;  %v1934_v46 = vpack.c.bf16 %v2364_v10, %v2362_v9  ;;  %s2289_s21 = smov 111   ;;  %s1761_s22 = sld [smem:[#allocation8]] }
  0x3b   :  { %2026 = vrot.lane.b32.xlu0 %v2360_v8, %s2277_s23  ;;  %v71_v14 = vand.u32 15, %v2366_v11  ;;  %v2382_v15 = vadd.s32 128, %v2366_v11  ;;  %vm181_vm4 = vcmp.lt.s32.totalorder %v2366_v11, 16  ;;  %vm119_vm5 = vcmp.ge.s32.totalorder %v2366_v11, 16  ;;  %s1886_s24 = sld [smem:[#allocation8 + $0x2]]  ;;  %s1887_s25 = sld [smem:[#allocation8 + $0x3]] }
  0x3c   :  { %vm2441_vm6 = vmpackc.low %vm119_vm5, %vm119_vm5  ;;  %vm147_vm8 = vcmp.lt.s32.totalorder %v2366_v11, 17  ;;  %vm507_vm9 = vcmp.lt.s32.totalorder %v2366_v11, 15  ;;  %vm691_vm10 = vcmp.lt.s32.totalorder %v2366_v11, 1  ;;  %vm1018_vm11 = vcmp.lt.s32.totalorder %v2366_v11, 127  ;;  %s2291_s26 = smov [#allocation9]  }
  0x3d   :  { %vm91_vm0 = vcmp.ne.s32.totalorder %v71_v14, 15  ;;  %v78_v17 = vand.u32 15, %v2382_v15  ;;  %vm2395_vm2 = vcmp.ne.s32.totalorder %v71_v14, 0  ;;  %vm1194_vm12 = vcmp.lt.s32.totalorder %v2366_v11, 113  ;;  %s1829_s27 = sshll.u32 %s2291_s26, 4  ;;  %s1830_s27 = int_to_ptr.vmem [resolvable:$true] %s1829_s27 }
  0x3e   :  { %2041 = vrot.lane.b32.xlu1 %v2372_v12, %s2277_s23  ;;  %v101_v18 = vsel %vm91_vm0, %v2362_v9, 0.0  ;;  %v103_v19 = vsel %vm91_vm0, %v2364_v10, 0.0  ;;  %v97_v20 = vsel %vm91_vm0, %v2346_v2, 0.0  ;;  %v99_v21 = vsel %vm91_vm0, %v2352_v5, 0.0  ;;  %s2245_s28 = scalar_lea.vmem %s1830_s27, 128  ;;  %p2250_p8 = scmp.lt.s32.totalorder %s1830_s27, %s1830_s27 }
  0x3f   :  { %2031 = vrot.lane.b32.xlu0 %v2378_v13, %s2277_s23  ;;  %v2050_v22 = vpack.i.bf16 %v103_v19, %v101_v18  ;;  %v2045_v23 = vpack.i.bf16 %v99_v21, %v97_v20  ;;  %vm92_vm1 = vcmp.ne.s32.totalorder %v78_v17, 15  ;;  %v115_v31 = vsel %vm2395_vm2, %v2362_v9, 0.0  ;;  %v199_v18 = vld [vmem:[#allocation6 + $0x2] sm:$0x3]  ;;  %s1885_s23 = sld [smem:[#allocation8 + $0x1]]  ;;  %p2246_p7 = scmp.ne.s32.totalorder %s1830_s27, %s2245_s28 }
  0x40   :  { %v102_v25 = vsel %vm92_vm1, %v2354_v6, 0.0  ;;  %v104_v26 = vsel %vm92_vm1, %v2356_v7, 0.0  ;;  %v98_v27 = vsel %vm92_vm1, %v2342_v0, 0.0  ;;  %v100_v28 = vsel %vm92_vm1, %v2344_v1, 0.0  ;;  %p2251_p9 = scmp.lt.s32.totalorder %s2245_s28, %s2245_s28 }
  0x41   :  { %v2060_v29 = vpack.i.bf16 %v104_v26, %v102_v25  ;;  %v2055_v30 = vpack.i.bf16 %v100_v28, %v98_v27  ;;  %v117_v32 = vsel %vm2395_vm2, %v2364_v10, 0.0  ;;  %v111_v33 = vsel %vm2395_vm2, %v2346_v2, 0.0 }
  0x42   :  { %2051 = vrot.lane.b32.xlu1 %v2050_v22, %s2283_s1  ;;  %v113_v34 = vsel %vm2395_vm2, %v2352_v5, 0.0  ;;  %vm106_vm3 = vcmp.ne.s32.totalorder %v78_v17, 0  ;;  %v2070_v35 = vpack.i.bf16 %v117_v32, %v115_v31  ;;  %vm126_vm13 = vcmp.lt.s32.totalorder %v2382_v15, 240  ;;  %p2252_p10 = por %p2251_p9, %p2250_p8 }
  0x43   :  { %2046 = vrot.lane.b32.xlu0 %v2045_v23, %s2283_s1  ;;  %v2065_v36 = vpack.i.bf16 %v113_v34, %v111_v33  ;;  %v116_v37 = vsel %vm106_vm3, %v2354_v6, 0.0  ;;  %v118_v38 = vsel %vm106_vm3, %v2356_v7, 0.0  ;;  %v112_v39 = vsel %vm106_vm3, %v2342_v0, 0.0  ;;  %vm2572_vm14 = vmpackc.low %vm126_vm13, %vm126_vm13 }
  0x44   :  { %v114_v40 = vsel %vm106_vm3, %v2344_v1, 0.0  ;;  %v2080_v41 = vpack.i.bf16 %v118_v38, %v116_v37  ;;  %vm1378_vm15 = vcmp.lt.s32.totalorder %v2366_v11, 112  ;;  %vm1562_vm0 = vcmp.lt.s32.totalorder %v2366_v11, 111  ;;  %v1580_v11 = vld [vmem:[#allocation6 + $0x10] sm:$0x3]  ;;  %p2253_p11 = pnand %p2252_p10, %p2246_p7 }
  0x45   :  { %v2075_v42 = vpack.i.bf16 %v114_v40, %v112_v39  ;;  %vm1730_vm1 = vcmask 1041408   ;;  %vm1765_vm2 = vcmask 1040384  }
  0x46   :  { %2061 = vrot.lane.b32.xlu1 %v2060_v29, %s2283_s1 }
  0x47   :  { %2056 = vrot.lane.b32.xlu0 %v2055_v30, %s2283_s1 }
  0x4a   :  { %2071 = vrot.lane.b32.xlu1 %v2070_v35, %s2284_s2 }
  0x4b   :  { %2066 = vrot.lane.b32.xlu0 %v2065_v36, %s2284_s2 }
  0x4e   :  { %2081 = vrot.lane.b32.xlu1 %v2080_v41, %s2284_s2 }
  0x4f   :  { %2076 = vrot.lane.b32.xlu0 %v2075_v42, %s2284_s2 }
  0x52   :  { %2091 = vrot.lane.b32.xlu1 %v2050_v22, %s2285_s17 }
  0x53   :  { %2086 = vrot.lane.b32.xlu0 %v2045_v23, %s2285_s17 }
  0x56   :  { %2101 = vrot.lane.b32.xlu1 %v2060_v29, %s2285_s17 }
  0x57   :  { %2096 = vrot.lane.b32.xlu0 %v2055_v30, %s2285_s17 }
  0x5a   :  { %2111 = vrot.lane.b32.xlu1 %v2070_v35, %s2286_s18 }
  0x5b   :  { %2106 = vrot.lane.b32.xlu0 %v2065_v36, %s2286_s18 }
  0x5e   :  { %2121 = vrot.lane.b32.xlu1 %v2080_v41, %s2286_s18 }
  0x5f   :  { %2116 = vrot.lane.b32.xlu0 %v2075_v42, %s2286_s18 }
  0x62   :  { %2131 = vrot.lane.b32.xlu1 %v2050_v22, %s2287_s19 }
  0x63   :  { %2126 = vrot.lane.b32.xlu0 %v2045_v23, %s2287_s19 }
  0x66   :  { %2141 = vrot.lane.b32.xlu1 %v2060_v29, %s2287_s19 }
  0x67   :  { %2136 = vrot.lane.b32.xlu0 %v2055_v30, %s2287_s19 }
  0x6a   :  { %2151 = vrot.lane.b32.xlu1 %v2378_v13, %s2288_s20 }
  0x6b   :  { %2146 = vrot.lane.b32.xlu0 %v2360_v8, %s2288_s20 }
  0x6e   :  { %2161 = vrot.lane.b32.xlu1 %v2372_v12, %s2288_s20 }
  0x6f   :  { %2156 = vrot.lane.b32.xlu0 %v2350_v4, %s2288_s20 }
  0x72   :  { %2171 = vrot.lane.b32.xlu1 %v2070_v35, %s2289_s21 }
  0x73   :  { %2166 = vrot.lane.b32.xlu0 %v2065_v36, %s2289_s21 }
  0x76   :  { %2181 = vrot.lane.b32.xlu1 %v2080_v41, %s2289_s21 }
  0x77   :  { %2176 = vrot.lane.b32.xlu0 %v2075_v42, %s2289_s21 }
  0xac   :  { %v2037_v47 = vpop.permute.xlu1 %2036 }
  0xad   :  { %v2039_v48 = vunpack.i.h.bf16 %v2037_v47  ;;  %v2038_v49 = vunpack.i.l.bf16 %v2037_v47  ;;  %v2027_v50 = vpop.permute.xlu0 %2026 }
  0xae   :  { %v2029_v51 = vunpack.i.h.bf16 %v2027_v50  ;;  %v2028_v52 = vunpack.i.l.bf16 %v2027_v50 }
  0xb0   :  { %v2042_v53 = vpop.permute.xlu1 %2041  ;;  %v182_v54 = vsel %vm181_vm4, %v2028_v52, %v2038_v49  ;;  %v183_v55 = vsel %vm181_vm4, %v2029_v51, %v2039_v48  ;;  %v186_v56 = vsel %vm181_vm4, %v2038_v49, %v2028_v52  ;;  %v187_v57 = vsel %vm181_vm4, %v2039_v48, %v2029_v51 }
  0xb1   :  { %v2044_v58 = vunpack.i.h.bf16 %v2042_v53  ;;  %v2043_v59 = vunpack.i.l.bf16 %v2042_v53  ;;  %v2032_v60 = vpop.permute.xlu0 %2031  ;;  %v1890_v61 = vpack.c.bf16 %v183_v55, %v182_v54  ;;  %v1892_v62 = vpack.c.bf16 %v187_v57, %v186_v56  ;;  %v164_v56 = vld [vmem:[#allocation6] sm:$0x3] }
  0xb2   :  { %v2034_v3 = vunpack.i.h.bf16 %v2032_v60  ;;  %v2033_v4 = vunpack.i.l.bf16 %v2032_v60 }
  0xb3   :  { %1891 = vmatprep.subr.bf16.mxu0 %v1890_v61 }
  0xb4   :  { %1894 = vmatpush1.bf16.msk.msra.mxu0 %vm2441_vm6, %v1892_v62  ;;  %v2052_v8 = vpop.permute.xlu1 %2051  ;;  %v184_v12 = vsel %vm181_vm4, %v2033_v4, %v2043_v59  ;;  %v185_v13 = vsel %vm181_vm4, %v2034_v3, %v2044_v58  ;;  %v188_v14 = vsel %vm181_vm4, %v2043_v59, %v2033_v4  ;;  %v189_v17 = vsel %vm181_vm4, %v2044_v58, %v2034_v3 }
  0xb5   :  { %v2047_v19 = vpop.permute.xlu0 %2046  ;;  %v1900_v20 = vpack.c.bf16 %v185_v13, %v184_v12  ;;  %v1902_v21 = vpack.c.bf16 %v189_v17, %v188_v14  ;;  %v2054_v22 = vunpack.i.h.bf16 %v2052_v8  ;;  %v2053_v23 = vunpack.i.l.bf16 %v2052_v8 }
  0xb6   :  { %v2049_v28 = vunpack.i.h.bf16 %v2047_v19  ;;  %v2048_v29 = vunpack.i.l.bf16 %v2047_v19 }
  0xb7   :  { %1901 = vmatprep.subr.bf16.mxu1 %v1900_v20  ;;  %1845 = vmatmul.mubr.msk.f32.vlgmr.msra.gmra.mrb[0].mxu0 %vm200_vm7, %v199_v18 }
  0xb8   :  { %1904 = vmatpush1.bf16.msk.msra.mxu1 %vm2441_vm6, %v1902_v21  ;;  %v2062_v24 = vpop.permute.xlu1 %2061  ;;  %342 = vmatprep.mubr.f32.mxu0 %v2282_v16 }
  0xb9   :  { %v2064_v25 = vunpack.i.h.bf16 %v2062_v24  ;;  %v2063_v26 = vunpack.i.l.bf16 %v2062_v24  ;;  %v2057_v27 = vpop.permute.xlu0 %2056 }
  0xba   :  { %v2059_v30 = vunpack.i.h.bf16 %v2057_v27  ;;  %v2058_v31 = vunpack.i.l.bf16 %v2057_v27 }
  0xbb   :  { %v154_v32 = vsel %vm147_vm8, %v2063_v26, %v2053_v23  ;;  %v155_v33 = vsel %vm147_vm8, %v2064_v25, %v2054_v22  ;;  %1851 = vmatmul.mubr.msk.f32.vlgmr.msra.gmra.mrb[0].mxu1 %vm200_vm7, %v199_v18  ;;  %v150_v34 = vsel %vm147_vm8, %v2053_v23, %v2063_v26  ;;  %v151_v35 = vsel %vm147_vm8, %v2054_v22, %v2064_v25 }
  0xbc   :  { %v152_v36 = vsel %vm147_vm8, %v2058_v31, %v2048_v29  ;;  %v153_v37 = vsel %vm147_vm8, %v2059_v30, %v2049_v28  ;;  %v2072_v38 = vpop.permute.xlu1 %2071  ;;  %v148_v39 = vsel %vm147_vm8, %v2048_v29, %v2058_v31  ;;  %484 = vmatprep.mubr.f32.mxu1 %v2282_v16  ;;  %v1907_v40 = vpack.c.bf16 %v155_v33, %v154_v32  ;;  %v525_v29 = vld [vmem:[#allocation6 + $0x4] sm:$0x3] }
  0xbd   :  { %v1897_v41 = vpack.c.bf16 %v153_v37, %v152_v36  ;;  %v2067_v42 = vpop.permute.xlu0 %2066  ;;  %v149_v47 = vsel %vm147_vm8, %v2049_v28, %v2059_v30  ;;  %v1905_v49 = vpack.c.bf16 %v151_v35, %v150_v34  ;;  %v2074_v50 = vunpack.i.h.bf16 %v2072_v38 }
  0xbe   :  { %v1895_v48 = vpack.c.bf16 %v149_v47, %v148_v39  ;;  %v2073_v51 = vunpack.i.l.bf16 %v2072_v38  ;;  %v2069_v57 = vunpack.i.h.bf16 %v2067_v42  ;;  %v2068_v58 = vunpack.i.l.bf16 %v2067_v42 }
  0xbf   :  { %1906 = vmatprep.subr.bf16.mxu1 %v1905_v49 }
  0xc0   :  { %1896 = vmatprep.subr.bf16.mxu0 %v1895_v48  ;;  %v2082_v52 = vpop.permute.xlu1 %2081  ;;  %1909 = vmatpush1.bf16.msk.msra.mxu1 %vm2441_vm6, %v1907_v40 }
  0xc1   :  { %1899 = vmatpush1.bf16.msk.msra.mxu0 %vm2441_vm6, %v1897_v41  ;;  %v2084_v53 = vunpack.i.h.bf16 %v2082_v52  ;;  %v2083_v54 = vunpack.i.l.bf16 %v2082_v52  ;;  %v2077_v55 = vpop.permute.xlu0 %2076 }
  0xc2   :  { %v2079_v59 = vunpack.i.h.bf16 %v2077_v55  ;;  %v2078_v60 = vunpack.i.l.bf16 %v2077_v55 }
  0xc3   :  { %v514_v61 = vsel %vm507_vm9, %v2083_v54, %v2073_v51  ;;  %v515_v62 = vsel %vm507_vm9, %v2084_v53, %v2074_v50  ;;  %v510_v3 = vsel %vm507_vm9, %v2073_v51, %v2083_v54  ;;  %v511_v4 = vsel %vm507_vm9, %v2074_v50, %v2084_v53  ;;  %1854 = vmatmul.mubr.msk.f32.vlgmr.msra.gmra.mrb[0].mxu1 %vm200_vm7, %v164_v56 }
  0xc4   :  { %v512_v8 = vsel %vm507_vm9, %v2078_v60, %v2068_v58  ;;  %v513_v12 = vsel %vm507_vm9, %v2079_v59, %v2069_v57  ;;  %1848 = vmatmul.mubr.msk.f32.vlgmr.msra.gmra.mrb[0].mxu0 %vm200_vm7, %v164_v56  ;;  %v2092_v13 = vpop.permute.xlu1 %2091  ;;  %v1917_v14 = vpack.c.bf16 %v515_v62, %v514_v61  ;;  %v508_v18 = vsel %vm507_vm9, %v2068_v58, %v2078_v60  ;;  %v701_v56 = vld [vmem:[#allocation6 + $0x6] sm:$0x3] }
  0xc5   :  { %v2087_v17 = vpop.permute.xlu0 %2086  ;;  %593 = vmatprep.mubr.f32.mxu0 %v2282_v16  ;;  %666 = vmatprep.mubr.f32.mxu1 %v2282_v16  ;;  %v1912_v19 = vpack.c.bf16 %v513_v12, %v512_v8  ;;  %v509_v20 = vsel %vm507_vm9, %v2069_v57, %v2079_v59  ;;  %v1915_v21 = vpack.c.bf16 %v511_v4, %v510_v3  ;;  %v2094_v22 = vunpack.i.h.bf16 %v2092_v13 }
  0xc6   :  { %v2093_v23 = vunpack.i.l.bf16 %v2092_v13  ;;  %v1910_v24 = vpack.c.bf16 %v509_v20, %v508_v18  ;;  %v2089_v30 = vunpack.i.h.bf16 %v2087_v17  ;;  %v2088_v31 = vunpack.i.l.bf16 %v2087_v17 }
  0xc7   :  { %1916 = vmatprep.subr.bf16.mxu1 %v1915_v21 }
  0xc8   :  { %v2102_v25 = vpop.permute.xlu1 %2101  ;;  %1911 = vmatprep.subr.bf16.mxu0 %v1910_v24  ;;  %1919 = vmatpush1.bf16.msk.msra.mxu1 %vm2441_vm6, %v1917_v14  ;;  %v852_v14 = vld [vmem:[#allocation6 + $0x8] sm:$0x3] }
  0xc9   :  { %v2104_v26 = vunpack.i.h.bf16 %v2102_v25  ;;  %v2103_v27 = vunpack.i.l.bf16 %v2102_v25  ;;  %v2097_v28 = vpop.permute.xlu0 %2096  ;;  %1914 = vmatpush1.bf16.msk.msra.mxu0 %vm2441_vm6, %v1912_v19 }
  0xca   :  { %v2099_v32 = vunpack.i.h.bf16 %v2097_v28  ;;  %v2098_v33 = vunpack.i.l.bf16 %v2097_v28 }
  0xcb   :  { %v698_v34 = vsel %vm691_vm10, %v2103_v27, %v2093_v23  ;;  %v699_v35 = vsel %vm691_vm10, %v2104_v26, %v2094_v22  ;;  %v694_v36 = vsel %vm691_vm10, %v2093_v23, %v2103_v27  ;;  %v695_v37 = vsel %vm691_vm10, %v2094_v22, %v2104_v26  ;;  %1860 = vmatmul.mubr.msk.f32.vlgmr.msra.gmra.mrb[0].mxu1 %vm200_vm7, %v525_v29 }
  0xcc   :  { %v1926_v38 = vpack.c.bf16 %v699_v35, %v698_v34  ;;  %v696_v39 = vsel %vm691_vm10, %v2098_v33, %v2088_v31  ;;  %v697_v63 = vsel %vm691_vm10, %v2099_v32, %v2089_v30  ;;  %v692_v40 = vsel %vm691_vm10, %v2088_v31, %v2098_v33  ;;  %v2112_v41 = vpop.permute.xlu1 %2111  ;;  %1857 = vmatmul.mubr.msk.f32.vlgmr.msra.gmra.mrb[0].mxu0 %vm200_vm7, %v525_v29 }
  0xcd   :  { %v1922_v42 = vpack.c.bf16 %v697_v63, %v696_v39  ;;  %v693_v47 = vsel %vm691_vm10, %v2089_v30, %v2099_v32  ;;  %v1924_v48 = vpack.c.bf16 %v695_v37, %v694_v36  ;;  %v2107_v49 = vpop.permute.xlu0 %2106  ;;  %842 = vmatprep.mubr.f32.mxu1 %v2282_v16  ;;  %769 = vmatprep.mubr.f32.mxu0 %v2282_v16  ;;  %v2114_v51 = vunpack.i.h.bf16 %v2112_v41 }
  0xce   :  { %v1920_v50 = vpack.c.bf16 %v693_v47, %v692_v40  ;;  %v2113_v52 = vunpack.i.l.bf16 %v2112_v41  ;;  %v2108_v53 = vunpack.i.l.bf16 %v2107_v49  ;;  %v2109_v55 = vunpack.i.h.bf16 %v2107_v49  ;;  %v1028_v40 = vld [vmem:[#allocation6 + $0xa] sm:$0x3] }
  0xcf   :  { %1925 = vmatprep.subr.bf16.mxu1 %v1924_v48 }
  0xd0   :  { %1921 = vmatprep.subr.bf16.mxu0 %v1920_v50  ;;  %1927 = vmatpush1.bf16.msra.mxu1 %v1926_v38  ;;  %v2122_v54 = vpop.permute.xlu1 %2121 }
  0xd1   :  { %1923 = vmatpush1.bf16.msra.mxu0 %v1922_v42  ;;  %v2117_v57 = vpop.permute.xlu0 %2116  ;;  %1933 = vmatprep.subr.bf16.mxu1 %v1932_v45  ;;  %v2124_v58 = vunpack.i.h.bf16 %v2122_v54  ;;  %v2123_v59 = vunpack.i.l.bf16 %v2122_v54 }
  0xd2   :  { %v2119_v60 = vunpack.i.h.bf16 %v2117_v57  ;;  %v2118_v61 = vunpack.i.l.bf16 %v2117_v57  ;;  %1929 = vmatprep.subr.bf16.mxu0 %v1928_v43 }
  0xd3   :  { %v1025_v62 = vsel %vm1018_vm11, %v2123_v59, %v2113_v52  ;;  %v1026_v3 = vsel %vm1018_vm11, %v2124_v58, %v2114_v51  ;;  %1862 = vmatmul.mubr.msk.f32.vlgmr.msra.gmra.mrb[0].mxu1 %vm200_vm7, %v701_v56  ;;  %v1021_v1 = vsel %vm1018_vm11, %v2113_v52, %v2123_v59  ;;  %v1022_v45 = vsel %vm1018_vm11, %v2114_v51, %v2124_v58 }
  0xd4   :  { %v1023_v6 = vsel %vm1018_vm11, %v2118_v61, %v2108_v53  ;;  %v2132_v7 = vpop.permute.xlu1 %2131  ;;  %1861 = vmatmul.mubr.msk.f32.vlgmr.msra.gmra.mrb[0].mxu0 %vm200_vm7, %v701_v56  ;;  %1935 = vmatpush1.bf16.msra.mxu1 %v1934_v46  ;;  %v1024_v43 = vsel %vm1018_vm11, %v2119_v60, %v2109_v55  ;;  %v1940_v8 = vpack.c.bf16 %v1026_v3, %v1025_v62 }
  0xd5   :  { %v2127_v0 = vpop.permute.xlu0 %2126  ;;  %1931 = vmatpush1.bf16.msra.mxu0 %v1930_v44  ;;  %920 = vmatprep.mubr.f32.mxu0 %v2282_v16  ;;  %v1936_v4 = vpack.c.bf16 %v1024_v43, %v1023_v6  ;;  %v1019_v9 = vsel %vm1018_vm11, %v2108_v53, %v2118_v61  ;;  %v1020_v10 = vsel %vm1018_vm11, %v2109_v55, %v2119_v60  ;;  %v2134_v46 = vunpack.i.h.bf16 %v2132_v7 }
  0xd6   :  { %993 = vmatprep.mubr.f32.mxu1 %v2282_v16  ;;  %v2133_v12 = vunpack.i.l.bf16 %v2132_v7  ;;  %v2129_v13 = vunpack.i.h.bf16 %v2127_v0  ;;  %v2128_v2 = vunpack.i.l.bf16 %v2127_v0  ;;  %1941 = vmatprep.subr.bf16.mxu1 %v1940_v8  ;;  %v1942_v44 = vpack.c.bf16 %v1022_v45, %v1021_v1  ;;  %v1212_v45 = vld [vmem:[#allocation6 + $0xc] sm:$0x3] }
  0xd7   :  { %1937 = vmatprep.subr.bf16.mxu0 %v1936_v4  ;;  %v1938_v20 = vpack.c.bf16 %v1020_v10, %v1019_v9 }
  0xd8   :  { %v2142_v5 = vpop.permute.xlu1 %2141 }
  0xd9   :  { %v2137_v17 = vpop.permute.xlu0 %2136  ;;  %v2144_v18 = vunpack.i.h.bf16 %v2142_v5  ;;  %v2143_v19 = vunpack.i.l.bf16 %v2142_v5 }
  0xda   :  { %v2139_v21 = vunpack.i.h.bf16 %v2137_v17  ;;  %v2138_v22 = vunpack.i.l.bf16 %v2137_v17 }
  0xdb   :  { %v1201_v23 = vsel %vm1194_vm12, %v2143_v19, %v2133_v12  ;;  %v1202_v24 = vsel %vm1194_vm12, %v2144_v18, %v2134_v46  ;;  %1864 = vmatmul.mubr.msk.f32.vlgmr.msra.gmra.mrb[0].mxu1 %vm200_vm7, %v852_v14  ;;  %v1197_v31 = vsel %vm1194_vm12, %v2133_v12, %v2143_v19  ;;  %v1198_v32 = vsel %vm1194_vm12, %v2134_v46, %v2144_v18 }
  0xdc   :  { %v1199_v25 = vsel %vm1194_vm12, %v2138_v22, %v2128_v2  ;;  %v1200_v26 = vsel %vm1194_vm12, %v2139_v21, %v2129_v13  ;;  %v2152_v15 = vpop.permute.xlu1 %2151  ;;  %1863 = vmatmul.mubr.msk.f32.vlgmr.msra.gmra.mrb[0].mxu0 %vm200_vm7, %v852_v14  ;;  %1943 = vmatpush1.bf16.msra.mxu1 %v1942_v44  ;;  %v1949_v30 = vpack.c.bf16 %v1202_v24, %v1201_v23  ;;  %v1396_v23 = vld [vmem:[#allocation6 + $0xe] sm:$0x3] }
  0xdd   :  { %v1944_v28 = vpack.c.bf16 %v1200_v26, %v1199_v25  ;;  %v2147_v29 = vpop.permute.xlu0 %2146  ;;  %1939 = vmatpush1.bf16.msra.mxu0 %v1938_v20  ;;  %1096 = vmatprep.mubr.f32.mxu0 %v2282_v16  ;;  %v1195_v33 = vsel %vm1194_vm12, %v2128_v2, %v2138_v22  ;;  %v1196_v34 = vsel %vm1194_vm12, %v2129_v13, %v2139_v21  ;;  %v2154_v35 = vunpack.i.h.bf16 %v2152_v15 }
  0xde   :  { %1169 = vmatprep.mubr.f32.mxu1 %v2282_v16  ;;  %v2153_v36 = vunpack.i.l.bf16 %v2152_v15  ;;  %v2149_v37 = vunpack.i.h.bf16 %v2147_v29  ;;  %v2148_v38 = vunpack.i.l.bf16 %v2147_v29  ;;  %1951 = vmatprep.subr.msk.bf16.mxu1 %vm2572_vm14, %v1949_v30  ;;  %v1952_v63 = vpack.c.bf16 %v1198_v32, %v1197_v31 }
  0xdf   :  { %1946 = vmatprep.subr.msk.bf16.mxu0 %vm2572_vm14, %v1944_v28  ;;  %v1947_v48 = vpack.c.bf16 %v1196_v34, %v1195_v33 }
  0xe0   :  { %v2162_v39 = vpop.permute.xlu1 %2161 }
  0xe1   :  { %v2157_v41 = vpop.permute.xlu0 %2156  ;;  %v2164_v42 = vunpack.i.h.bf16 %v2162_v39  ;;  %v2163_v47 = vunpack.i.l.bf16 %v2162_v39 }
  0xe2   :  { %v2159_v49 = vunpack.i.h.bf16 %v2157_v41  ;;  %v2158_v50 = vunpack.i.l.bf16 %v2157_v41 }
  0xe3   :  { %v1385_v51 = vsel %vm1378_vm15, %v2163_v47, %v2153_v36  ;;  %v1386_v52 = vsel %vm1378_vm15, %v2164_v42, %v2154_v35  ;;  %1866 = vmatmul.mubr.msk.f32.vlgmr.msra.gmra.mrb[0].mxu1 %vm200_vm7, %v1028_v40  ;;  %v1381_v59 = vsel %vm1378_vm15, %v2153_v36, %v2163_v47  ;;  %v1382_v60 = vsel %vm1378_vm15, %v2154_v35, %v2164_v42 }
  0xe4   :  { %v1383_v53 = vsel %vm1378_vm15, %v2158_v50, %v2148_v38  ;;  %v1384_v54 = vsel %vm1378_vm15, %v2159_v49, %v2149_v37  ;;  %v2172_v55 = vpop.permute.xlu1 %2171  ;;  %1865 = vmatmul.mubr.msk.f32.vlgmr.msra.gmra.mrb[0].mxu0 %vm200_vm7, %v1028_v40  ;;  %1953 = vmatpush1.bf16.msra.mxu1 %v1952_v63  ;;  %v1959_v58 = vpack.c.bf16 %v1386_v52, %v1385_v51  ;;  %v2290_v42 = vmov 0  }
  0xe5   :  { %v1954_v56 = vpack.c.bf16 %v1384_v54, %v1383_v53  ;;  %v2167_v57 = vpop.permute.xlu0 %2166  ;;  %1948 = vmatpush1.bf16.msra.mxu0 %v1947_v48  ;;  %1280 = vmatprep.mubr.f32.mxu0 %v2282_v16  ;;  %v1379_v61 = vsel %vm1378_vm15, %v2148_v38, %v2158_v50  ;;  %v1380_v62 = vsel %vm1378_vm15, %v2149_v37, %v2159_v49  ;;  %v2174_v3 = vunpack.i.h.bf16 %v2172_v55 }
  0xe6   :  { %1353 = vmatprep.mubr.f32.mxu1 %v2282_v16  ;;  %v2173_v6 = vunpack.i.l.bf16 %v2172_v55  ;;  %v2169_v7 = vunpack.i.h.bf16 %v2167_v57  ;;  %v2168_v0 = vunpack.i.l.bf16 %v2167_v57  ;;  %1961 = vmatprep.subr.msk.bf16.mxu1 %vm2572_vm14, %v1959_v58  ;;  %v1962_v43 = vpack.c.bf16 %v1382_v60, %v1381_v59 }
  0xe7   :  { %1956 = vmatprep.subr.msk.bf16.mxu0 %vm2572_vm14, %v1954_v56  ;;  %v1957_v10 = vpack.c.bf16 %v1380_v62, %v1379_v61  ;;  %2185 = vset.pattern.permute.xlu1 %v2290_v42  ;;  %v1762_v58 = vstv %s1761_s22  ;;  %v1764_v59 = vstv %s1885_s23  ;;  %v1768_v61 = vstv %s1886_s24 }
  0xe8   :  { %v2182_v1 = vpop.permute.xlu1 %2181  ;;  %2186 = vset.pattern.permute.xlu0 %v2290_v42  ;;  %v1766_v60 = vsel %vm1765_vm2, %v1762_v58, %v1764_v59  ;;  %v1770_v62 = vstv %s1887_s25 }
  0xe9   :  { %v2177_v4 = vpop.permute.xlu0 %2176  ;;  %v2184_v8 = vunpack.i.h.bf16 %v2182_v1  ;;  %v2183_v9 = vunpack.i.l.bf16 %v2182_v1 }
  0xea   :  { %v2179_v46 = vunpack.i.h.bf16 %v2177_v4  ;;  %v2178_v12 = vunpack.i.l.bf16 %v2177_v4 }
  0xeb   :  { %v1569_v13 = vsel %vm1562_vm0, %v2183_v9, %v2173_v6  ;;  %v1570_v2 = vsel %vm1562_vm0, %v2184_v8, %v2174_v3  ;;  %1872 = vmatmul.mubr.msk.f32.vlgmr.msra.gmra.mrb[0].mxu1 %vm200_vm7, %v1212_v45  ;;  %v1565_v18 = vsel %vm1562_vm0, %v2173_v6, %v2183_v9  ;;  %v1566_v19 = vsel %vm1562_vm0, %v2174_v3, %v2184_v8 }
  0xec   :  { %v1567_v5 = vsel %vm1562_vm0, %v2178_v12, %v2168_v0  ;;  %v1568_v44 = vsel %vm1562_vm0, %v2179_v46, %v2169_v7  ;;  %1869 = vmatmul.mubr.msk.f32.vlgmr.msra.gmra.mrb[0].mxu0 %vm200_vm7, %v1212_v45  ;;  %1963 = vmatpush1.bf16.msra.mxu1 %v1962_v43  ;;  %v1969_v17 = vpack.c.bf16 %v1570_v2, %v1569_v13 }
  0xed   :  { %v1964_v14 = vpack.c.bf16 %v1568_v44, %v1567_v5  ;;  %1958 = vmatpush1.bf16.msra.mxu0 %v1957_v10  ;;  %1464 = vmatprep.mubr.f32.mxu0 %v2282_v16  ;;  %v1563_v20 = vsel %vm1562_vm0, %v2168_v0, %v2178_v12  ;;  %v1564_v21 = vsel %vm1562_vm0, %v2169_v7, %v2179_v46 }
  0xee   :  { %1537 = vmatprep.mubr.f32.mxu1 %v2282_v16  ;;  %1971 = vmatprep.subr.msk.bf16.mxu1 %vm2572_vm14, %v1969_v17  ;;  %v1972_v22 = vpack.c.bf16 %v1566_v19, %v1565_v18  ;;  %v1967_v24 = vpack.c.bf16 %v1564_v21, %v1563_v20  ;;  %v1771_v7 = vsel %vm1765_vm2, %v1768_v61, %v1770_v62 }
  0xef   :  { %1966 = vmatprep.subr.msk.bf16.mxu0 %vm2572_vm14, %v1964_v14 }
  0xf3   :  { %1878 = vmatmul.mubr.msk.f32.vlgmr.msra.gmra.mrb[0].mxu1 %vm200_vm7, %v1396_v23 }
  0xf4   :  { %1875 = vmatmul.mubr.msk.f32.vlgmr.msra.gmra.mrb[0].mxu0 %vm200_vm7, %v1396_v23  ;;  %1973 = vmatpush1.bf16.msra.mxu1 %v1972_v22 }
  0xf5   :  { %1968 = vmatpush1.bf16.msra.mxu0 %v1967_v24  ;;  %1648 = vmatprep.mubr.f32.mxu0 %v2282_v16 }
  0xf6   :  { %1721 = vmatprep.mubr.f32.mxu1 %v2282_v16 }
  0xfb   :  { %1884 = vmatmul.mubr.msk.f32.vlgmr.msra.gmra.mrb[0].mxu1 %vm200_vm7, %v1580_v11 }
  0xfc   :  { %1881 = vmatmul.mubr.msk.f32.vlgmr.msra.gmra.mrb[0].mxu0 %vm200_vm7, %v1580_v11 }
 0x1ce   :  { %v1723_v25 = vpop.f32.mrb[0].mxu1 }
 0x1cf   :  { %v1650_v26 = vpop.f32.mrb[0].mxu0  ;;  %v1749_v27 = vmul.f32 %v1723_v25, %v1723_v25  ;;  %v1725_v15 = vpop.f32.mrb[1].mxu1  ;;  %v1743_v28 = vsel %vm1730_vm1, %v1723_v25, 0.0 }
 0x1d0   :  { %v1736_v29 = vmul.f32 %v1650_v26, %v1650_v26  ;;  %v1652_v30 = vpop.f32.mrb[1].mxu0  ;;  %v1744_v31 = vsel %vm1730_vm1, %v1725_v15, 0.0  ;;  %v1750_v32 = vmul.f32 %v1725_v15, %v1725_v15  ;;  %v1731_v33 = vsel %vm1730_vm1, %v1650_v26, 0.0 }
 0x1d1   :  { %v1732_v16 = vsel %vm1730_vm1, %v1652_v30, 0.0  ;;  %v1737_v34 = vmul.f32 %v1652_v30, %v1652_v30  ;;  %v1745_v35 = vadd.f32 %v1744_v31, %v1743_v28  ;;  %v1751_v36 = vsel %vm1730_vm1, %v1749_v27, 0.0 }
 0x1d2   :  { %v1733_v37 = vadd.f32 %v1732_v16, %v1731_v33  ;;  %v1738_v38 = vsel %vm1730_vm1, %v1736_v29, 0.0  ;;  %v1752_v39 = vsel %vm1730_vm1, %v1750_v32, 0.0 }
 0x1d3   :  { %1746 = vadd.xlane.f32.xlu1 %v1745_v35  ;;  %v1739_v63 = vsel %vm1730_vm1, %v1737_v34, 0.0  ;;  %v1753_v40 = vadd.f32 %v1752_v39, %v1751_v36 }
 0x1d4   :  { %1734 = vadd.xlane.f32.xlu0 %v1733_v37  ;;  %v1740_v41 = vadd.f32 %v1739_v63, %v1738_v38 }
 0x1d8   :  { %1741 = vadd.xlane.f32.xlu0 %v1740_v41 }
 0x1dc   :  { %1754 = vadd.xlane.f32.xlu0 %v1753_v40 }
 0x260   :  { %v1747_v47 = vpop.xlane.xlu1 %1746 }
 0x261   :  { %v1735_v48 = vpop.xlane.xlu0 %1734 }
 0x262   :  { %v1748_v49 = vadd.f32 %v1747_v47, %v1735_v48 }
 0x264   :  { %v1757_v51 = vmul.f32 0.001953125, %v1748_v49 }
 0x265   :  { %v1742_v50 = vpop.xlane.xlu0 %1741 }
 0x266   :  { %v1759_v54 = vmul.f32 %v1757_v51, %v1757_v51 }
 0x269   :  { %v1755_v52 = vpop.xlane.xlu0 %1754 }
 0x26a   :  { %v1756_v53 = vadd.f32 %v1755_v52, %v1742_v50 }
 0x26c   :  { %v1758_v55 = vmul.f32 0.001953125, %v1756_v53 }
 0x26e   :  { %v1760_v56 = vsub.f32 %v1758_v55, %v1759_v54 }
 0x270   :  { %v1772_v57 = vadd.f32 0.1, %v1760_v56 }
 0x272   :  { %2187 = vrsqrt.f32 %v1772_v57 }
 0x27c   :  { %v2188_v3 = vpop.eup %2187 }
 0x27d   :  { %v1774_v6 = vmul.f32 %v2188_v3, %v1766_v60 }
 0x27f   :  { %1779 = vperm.xlu1 %2185, %v1774_v6   ;;  %v1775_v0 = vmul.f32 %v1774_v6, %v1757_v51 }
 0x281   :  { %v1776_v1 = vsub.f32 %v1771_v7, %v1775_v0 }
 0x283   :  { %1786 = vperm.xlu0 %2186, %v1776_v1  }
 0x2fe   :  { %v1780_v43 = vpop.permute.xlu1 %1779 }
 0x2ff   :  { %v1782_v45 = vmul.f32 %v1780_v43, %v1650_v26  ;;  %v1783_v4 = vmul.f32 %v1780_v43, %v1652_v30  ;;  %v1805_v8 = vmul.f32 %v1780_v43, %v1723_v25  ;;  %v1806_v9 = vmul.f32 %v1780_v43, %v1725_v15 }
 0x302   :  { %v1787_v10 = vpop.permute.xlu0 %1786 }
 0x303   :  { %v1789_v46 = vadd.f32 %v1787_v10, %v1782_v45  ;;  %v1790_v12 = vadd.f32 %v1787_v10, %v1783_v4  ;;  %v1807_v13 = vadd.f32 %v1805_v8, %v1787_v10  ;;  %v1808_v2 = vadd.f32 %v1806_v9, %v1787_v10 }
 0x305   :  { %v1791_v5 = vmax.f32 %v1789_v46, 0.0  ;;  %v1792_v44 = vmax.f32 %v1790_v12, 0.0  ;;  %v1809_v14 = vmax.f32 %v1807_v13, 0.0  ;;  %v1810_v17 = vmax.f32 %v1808_v2, 0.0 }
 0x307   :  { %v1795_v18 = vcombine.low %v1791_v5, %v1792_v44  ;;  %v1813_v19 = vcombine.low %v1809_v14, %v1810_v17 }
 0x309   :  { %1888 = vst.sshfl [vmem:[#allocation9] sm:$0x33 pattern:$0x76325410] %v1795_v18 }
 0x30a   :  { %1889 = vst.sshfl [vmem:[#allocation9 + $0x4] sm:$0x33 pattern:$0x76325410] %v1813_v19 }
 0x30b   :  { %2256 = shalt.err (!%p2253_p11)
}
 0x30c   :  { %s2257_s4 = scalar_lea.hbm %s2670_s3, 128 }
 0x30d   :  { %p2258_p12 = scmp.ne.s32.totalorder %s2670_s3, %s2257_s4  ;;  %p2261_p13 = scmp.lt.u32.totalorder %s2257_s4, %s2670_s3 }
 0x30f   :  { %p2263_p0 = pnand %p2261_p13, %p2258_p12 }
 0x311   :  { %2266 = shalt.err (!%p2263_p0)
}
 0x312   :  { %s2292_s0 = smov 64   ;;  %s2293_s9 = smov 4  }
 0x313   :  { %1835 = dma.vmem_to_hbm [thread:$0]  %s1830_s27, 128, %s2670_s3, [#allocation4], %s2292_s0, %s2292_s0, %s2293_s9  }
 0x314   :  { %2273 = dma.done.wait [#allocation4], 128  }
 0x315   :  { %2274 = vsyncadd [#allocation4], 4294967168 }
 0x316   :  { %1839 = vsyncpa [#allocation3], 1 }
 0x317   :  { %1840 = vsyncpa [#allocation7], 1 }
 0x318   :  { %1841 = vsyncpa [#allocation4], 1 }
 0x319   :  { %1842 = vsyncpa [#allocation5], 1 }

</bundles_post_ra>
